<compile_context>
chip_gen: v7x
topology: tpu7x:2x2x1
jax: 0.10.0
libtpu: 0.0.40
codegen_flags: <defaults>
</compile_context>

<pallas_src>
import functools
import math

import jax
import jax.numpy as jnp
from jax.experimental import pallas as pl
from jax.experimental.pallas import tpu as pltpu


def _swap_leading_axes(x):
    """(a, b, c) -> (b, a, c); the minor (lane) dim stays minor."""
    if hasattr(pltpu, "einshape"):            # lane-layout-aware relayout
        return pltpu.einshape("abc->bac", x)
    return jnp.transpose(x, (1, 0, 2))        # fallback for older jax


def _mha_fused_kernel(x_ref, w_ref, o_ref, *, head, dk):
    """Fused multi-head attention, all heads batched in one step.

    x_ref : (S, D)        bf16 token embeddings
    w_ref : (D, 3*H*dk)   bf16 packed [Wq/sqrt(dk) | Wk | Wv], head-major columns
    o_ref : (S, H*dk)     f32 concatenated head outputs (== torch.cat(dim=1))
    """
    s_len = x_ref.shape[0]

    # One fused QKV projection: single MXU matmul, bf16 operands, f32 accumulation.
    qkv = jnp.dot(x_ref[...], w_ref[...],
                  preferred_element_type=jnp.float32)              # (S, 3*H*dk)

    # Single layout-aware relayout to a batched, head-major view: (3H, S, dk).
    qkv = _swap_leading_axes(qkv.reshape(s_len, 3 * head, dk))
    q = qkv[:head]                       # 1/sqrt(dk) already folded into Wq
    k = qkv[head:2 * head]
    v = qkv[2 * head:]

    # Batched scores for all heads: einsum('hqd,hkd->hqk') (contract dk, batch h).
    s = jax.lax.dot_general(q, k, (((2,), (2,)), ((0,), (0,))),
                            preferred_element_type=jnp.float32)    # (H, S, S)

    # softmax over the key axis == torch.softmax(dim=1) on each per-head (S, S).
    s = s - jnp.max(s, axis=-1, keepdims=True)
    p = jnp.exp(s)
    inv = pl.reciprocal(jnp.sum(p, axis=-1, keepdims=True), approx=True)  # EUP
    p = p * inv

    # Batched PV: einsum('hqk,hkd->hqd').
    out = jax.lax.dot_general(p, v, (((2,), (1,)), ((0,), (0,))),
                              preferred_element_type=jnp.float32)  # (H, S, dk)

    # Single relayout back to the lane-major concatenated slab and one dense store.
    o_ref[...] = _swap_leading_axes(out).reshape(s_len, head * dk).astype(o_ref.dtype)


def pack_qkv_weights(w_q, w_k, w_v, dtype=jnp.bfloat16):
    """(H, D, dk) x3 -> (D, 3*H*dk) packed weights, head-major columns, with the
    1/sqrt(dk) scale folded into the Wq columns. Call ONCE (outside the
    per-forward path) and reuse the result every forward."""
    h, d, dk = w_q.shape

    def _flat(w):                                   # (H, D, dk) -> (D, H*dk)
        return jnp.transpose(w, (1, 0, 2)).reshape(d, h * dk)

    scale = 1.0 / math.sqrt(dk)                     # module divides by sqrt(dv), dv == dk
    w_all = jnp.concatenate([_flat(w_q) * scale, _flat(w_k), _flat(w_v)], axis=1)
    return w_all.astype(dtype)


@functools.partial(jax.jit, static_argnames=("head", "dk"))
def multi_head_attention(tokens_embedding, w_all, *, head, dk):
    """tokens_embedding: (S, D) f32; w_all: pre-packed (D, 3*H*dk) bf16.
    Returns the (S, H*dk) concatenated head outputs in f32."""
    s_len, _ = tokens_embedding.shape
    return pl.pallas_call(
        functools.partial(_mha_fused_kernel, head=head, dk=dk),
        out_shape=jax.ShapeDtypeStruct((s_len, head * dk), jnp.float32),
        in_specs=[
            pl.BlockSpec(memory_space=pltpu.MemorySpace.VMEM),   # x, fully resident (toy)
            pl.BlockSpec(memory_space=pltpu.MemorySpace.VMEM),   # packed QKV weights
        ],
        out_specs=pl.BlockSpec(memory_space=pltpu.MemorySpace.VMEM),
    )(tokens_embedding.astype(jnp.bfloat16), w_all)


def _reference(tokens_embedding, w_q, w_k, w_v, matmul_dtype=jnp.float32):
    """Pure-JAX mirror of the PyTorch forward. `matmul_dtype` sets the matmul
    operand dtype so the kernel's bf16-MXU numerics can be matched exactly
    (pass jnp.float32 for the full-precision module math)."""
    h, _, dk = w_q.shape
    x = tokens_embedding.astype(matmul_dtype)
    outs = []
    for i in range(h):
        q = jnp.dot(x, w_q[i].astype(matmul_dtype), preferred_element_type=jnp.float32)
        k = jnp.dot(x, w_k[i].astype(matmul_dtype), preferred_element_type=jnp.float32)
        v = jnp.dot(x, w_v[i].astype(matmul_dtype), preferred_element_type=jnp.float32)
        s = jnp.dot(q, k.T) / math.sqrt(dk)
        p = jax.nn.softmax(s, axis=1)
        outs.append(jnp.dot(p, v))
    return jnp.concatenate(outs, axis=1)


if __name__ == "__main__":
    # Small shapes consistent with the module: seq=8 tokens, d_model=32, 8 heads.
    seq = 8
    d_model = 32
    head = 8
    dk = d_model // head

    key = jax.random.PRNGKey(0)
    kx, kq, kk, kv = jax.random.split(key, 4)

    tokens_embedding = jax.random.normal(kx, (seq, d_model), dtype=jnp.float32)
    w_q = jax.random.normal(kq, (head, d_model, dk), dtype=jnp.float32)
    w_k = jax.random.normal(kk, (head, d_model, dk), dtype=jnp.float32)
    w_v = jax.random.normal(kv, (head, d_model, dk), dtype=jnp.float32)

    # Pack (and scale-fold) the QKV weights ONCE, outside the per-forward path.
    w_all = pack_qkv_weights(w_q, w_k, w_v)

    out = jax.block_until_ready(
        multi_head_attention(tokens_embedding, w_all, head=head, dk=dk))
    assert out.shape == (seq, d_model), out.shape

    # Numerics-matched reference: same bf16 MXU operands, f32 accumulation and
    # f32 softmax. Remaining kernel-vs-reference deltas are only MXU accumulation
    # order and the approx (EUP) reciprocal in the softmax denominator.
    ref = _reference(tokens_embedding, w_q, w_k, w_v, matmul_dtype=jnp.bfloat16)
    assert jnp.allclose(out, ref, atol=2e-2, rtol=2e-2), (
        "mismatch vs reference, max abs diff = "
        f"{float(jnp.max(jnp.abs(out - ref)))}")

    print("KERNEL_OK")
</pallas_src>

<mosaic_0001>
module attributes {stable_mosaic.version = 11 : i64} {
  func.func @_mha_fused_kernel(%arg0: memref<8x32xbf16, #tpu.memory_space<vmem>>, %arg1: memref<32x96xbf16, #tpu.memory_space<vmem>>, %arg2: memref<8x32xf32, #tpu.memory_space<vmem>>) attributes {dimension_semantics = [], scalar_prefetch = 0 : i64, scratch_operands = 0 : i64, tpu.core_type = #tpu.core_type<tc>} {
    %c0 = arith.constant 0 : index
    %c0_0 = arith.constant 0 : index
    %0 = vector.load %arg0[%c0, %c0_0] : memref<8x32xbf16, #tpu.memory_space<vmem>>, vector<8x32xbf16>
    %c0_1 = arith.constant 0 : index
    %c0_2 = arith.constant 0 : index
    %1 = vector.load %arg1[%c0_1, %c0_2] : memref<32x96xbf16, #tpu.memory_space<vmem>>, vector<32x96xbf16>
    %cst = arith.constant dense<0.000000e+00> : vector<8x96xf32>
    %2 = tpu.matmul %0, %1, %cst {dimension_numbers = #tpu.dot_dimension_numbers<[1], [0], [0], [1], [0, 0, 1, 1], [], []>} : vector<8x32xbf16>, vector<32x96xbf16>, vector<8x96xf32> -> vector<8x96xf32>
    %3 = vector.shape_cast %2 : vector<8x96xf32> to vector<8x24x4xf32>
    %4 = tpu.transpose %3, [1, 0, 2] : vector<8x24x4xf32> -> vector<24x8x4xf32>
    %5 = vector.extract_strided_slice %4 {offsets = [0, 0, 0], sizes = [8, 8, 4], strides = [1, 1, 1]} : vector<24x8x4xf32> to vector<8x8x4xf32>
    %6 = vector.extract_strided_slice %4 {offsets = [8, 0, 0], sizes = [8, 8, 4], strides = [1, 1, 1]} : vector<24x8x4xf32> to vector<8x8x4xf32>
    %7 = vector.extract_strided_slice %4 {offsets = [16, 0, 0], sizes = [8, 8, 4], strides = [1, 1, 1]} : vector<24x8x4xf32> to vector<8x8x4xf32>
    %cst_3 = arith.constant dense<0.000000e+00> : vector<8x8x8xf32>
    %8 = tpu.matmul %5, %6, %cst_3 {dimension_numbers = #tpu.dot_dimension_numbers<[2], [2], [1], [1], [0, 0, 0, 1, 1, 1], [0], [0]>} : vector<8x8x4xf32>, vector<8x8x4xf32>, vector<8x8x8xf32> -> vector<8x8x8xf32>
    %cst_4 = arith.constant dense<0xFF800000> : vector<8x8xf32>
    %9 = vector.multi_reduction <maximumf>, %8, %cst_4 [2] : vector<8x8x8xf32> to vector<8x8xf32>
    %10 = vector.shape_cast %9 : vector<8x8xf32> to vector<8x8x1xf32>
    %11 = vector.broadcast %10 : vector<8x8x1xf32> to vector<8x8x8xf32>
    %12 = arith.subf %8, %11 : vector<8x8x8xf32>
    %13 = math.exp %12 : vector<8x8x8xf32>
    %cst_5 = arith.constant dense<0.000000e+00> : vector<8x8xf32>
    %14 = vector.multi_reduction <add>, %13, %cst_5 [2] : vector<8x8x8xf32> to vector<8x8xf32>
    %15 = vector.shape_cast %14 : vector<8x8xf32> to vector<8x8x1xf32>
    %16 = tpu.reciprocal %15 {approx = true} : vector<8x8x1xf32> -> vector<8x8x1xf32>
    %17 = vector.broadcast %16 : vector<8x8x1xf32> to vector<8x8x8xf32>
    %18 = arith.mulf %13, %17 : vector<8x8x8xf32>
    %cst_6 = arith.constant dense<0.000000e+00> : vector<8x8x4xf32>
    %19 = tpu.matmul %18, %7, %cst_6 {dimension_numbers = #tpu.dot_dimension_numbers<[2], [1], [1], [2], [0, 0, 0, 1, 1, 2], [0], [0]>} : vector<8x8x8xf32>, vector<8x8x4xf32>, vector<8x8x4xf32> -> vector<8x8x4xf32>
    %20 = tpu.transpose %19, [1, 0, 2] : vector<8x8x4xf32> -> vector<8x8x4xf32>
    %21 = vector.shape_cast %20 : vector<8x8x4xf32> to vector<8x32xf32>
    %c0_7 = arith.constant 0 : index
    %c0_8 = arith.constant 0 : index
    %22 = vector.load %arg2[%c0_7, %c0_8] : memref<8x32xf32, #tpu.memory_space<vmem>>, vector<8x32xf32>
    tpu.vector_store %arg2[%c0_7, %c0_8], %21 {strides = array<i32>} : memref<8x32xf32, #tpu.memory_space<vmem>>, vector<8x32xf32>,
    return
  }
}

</mosaic_0001>

<bundles_post_ra>
// kernel: multi_head_attention.1
= control target key start
LH: loop header
LB: loop body
LE: loop exit
PB: predicated region body
PF: predicated region fallthrough
CT: control target
= control target key end

     0   :  { %7 = vsyncpa [#allocation3], 0  ;;  %s3302_s0 = inlined_call_operand.vmem [shape: bf16[8,32], index: 0, kind: input, shape index: {}]   ;;  %s3303_s1 = inlined_call_operand.hbm [shape: bf16[32,96], index: 1, kind: input, shape index: {}]   ;;  %s3304_s2 = inlined_call_operand.hbm [shape: f32[8,32], index: 2, kind: output, shape index: {}]  }
   0x1   :  { %8 = vsyncpa [#allocation4], 0  ;;  %s2884_s9 = smov [#allocation2]   ;;  %s2836_s13 = scalar_lea.hbm %s3303_s1, 256 }
   0x2   :  { %s16_s10 = sshll.u32 %s2884_s9, 4  ;;  %p2837_p0 = scmp.ne.s32.totalorder %s3303_s1, %s2836_s13  ;;  %s17_s10 = int_to_ptr.vmem [resolvable:$true] %s16_s10 }
   0x3   :  { %p2840_p1 = scmp.lt.u32.totalorder %s2836_s13, %s3303_s1 }
   0x5   :  { %p2842_p2 = pnand %p2840_p1, %p2837_p0 }
   0x7   :  { %2845 = shalt.err (!%p2842_p2)
}
   0x8   :  { %s2846_s18 = scalar_lea.vmem %s17_s10, 256  ;;  %p2851_p4 = scmp.lt.s32.totalorder %s17_s10, %s17_s10 }
   0x9   :  { %p2847_p3 = scmp.ne.s32.totalorder %s17_s10, %s2846_s18  ;;  %p2852_p5 = scmp.lt.s32.totalorder %s2846_s18, %s2846_s18 }
   0xb   :  { %p2853_p6 = por %p2852_p5, %p2851_p4 }
   0xd   :  { %p2854_p7 = pnand %p2853_p6, %p2847_p3 }
   0xf   :  { %2857 = shalt.err (!%p2854_p7)
}
  0x10   :  { %s2885_s19 = smov 64   ;;  %s2886_s20 = smov 4  }
  0x11   :  { %22 = dma.hbm_to_vmem [thread:$0]  %s3303_s1, 256, %s17_s10, [#allocation3], %s2885_s19, %s2885_s19, %s2886_s20  }
  0x12   :  { %2880 = dma.done.wait [#allocation3], 256  }
  0x13   :  { %2881 = vsyncadd [#allocation3], 4294967040  ;;  %v2887_v0 = vmov 0.0   ;;  %vm2888_vm0 = vmmov 0   ;;  %v2802_v1 = vld [vmem:[#allocation2] sm:$0xff]   ;;  %v2803_v2 = vld [vmem:[#allocation2 + $0x8] sm:$0xff]   ;;  %v163_v10 = vlaneseq }
  0x14   :  { %2678 = vmatprep.subr.bf16.mxu0 %v2887_v0  ;;  %2682 = vmatprep.mubr.msk.bf16.mxu0 %vm2888_vm0, %v2887_v0  ;;  %v27_v3 = vld [vmem:[%s3302_s0] sm:$0xf]  ;;  %vm44_vm1 = vcmask 261120   ;;  %s2889_s24 = smov 88   ;;  %s2890_s25 = smov 96   ;;  %vm974_vm2 = vcmask 31744  }
  0x15   :  { %2686 = vmatprep.subr.mxu1 %v2887_v0  ;;  %2688 = vmatprep.mubr.msk.f32.mxu1 %vm2888_vm0, %v2887_v0  ;;  %s2891_s0 = smov 84   ;;  %s2892_s26 = smov 92   ;;  %v2907_v8 = vmov 1983009808   ;;  %v2908_v11 = vmov 1934713408  }
  0x16   :  { %2679 = vmatpush3.bf16.msra.mxu0 %v2802_v1  ;;  %s2893_s27 = smov 120   ;;  %s2894_s28 = smov 124   ;;  %v161_v9 = vunpack.c.l.s4 %v2907_v8  ;;  %v225_v12 = vunpack.c.l.s4 %v2908_v11  ;;  %v164_v14 = vshrl.u32 %v163_v10, 7  ;;  %vm1583_vm3 = vcmask 64512  }
  0x17   :  { %2680 = vmatprep.subr.bf16.mxu0 %v2887_v0  ;;  %s2895_s29 = smov 80   ;;  %s2896_s30 = smov 116   ;;  %vm2558_vm4 = vcmask 97280   ;;  %vm2560_vm5 = vcmask 130048   ;;  %vm2562_vm6 = vcmask 162816   ;;  %vm2564_vm7 = vcmask 195584  }
  0x18   :  { %s2897_s3 = smov 72   ;;  %s2898_s4 = smov 76   ;;  %v162_v13 = vunpack.c.0.s8 %v161_v9  ;;  %v226_v17 = vunpack.c.0.s8 %v225_v12  ;;  %vm2566_vm8 = vcmask 228352  }
  0x19   :  { %s2899_s5 = smov 112   ;;  %s2900_s6 = smov 68  }
  0x1a   :  { %2681 = vmatpush3.bf16.msra.mxu0 %v2803_v2  ;;  %s2901_s7 = smov 104   ;;  %s2902_s8 = smov 108   ;;  %v2986_v18 = vsub.s32 %v162_v13, %v164_v14  ;;  %v2988_v25 = vsub.s32 %v226_v17, %v164_v14 }
  0x1b   :  { %2701 = vmatprep.subr.mxu0 %v2887_v0  ;;  %s2903_s9 = smov 60   ;;  %s2904_s10 = smov 100  }
  0x1c   :  { %s2905_s11 = smov 56   ;;  %s2906_s12 = smov 52  }
  0x1d   :  { %2683 = vmatmul.mubr.msk.bf16.vlgmr.msra.gmra.mrb[0].mxu0 %vm44_vm1, %v27_v3  ;;  %s2909_s13 = smov 44   ;;  %s2910_s14 = smov 48  }
  0x1e   :  { %2703 = vmatprep.mubr.msk.f32.mxu0 %vm2888_vm0, %v2887_v0  ;;  %s2911_s15 = smov 40   ;;  %s2912_s16 = smov 36  }
  0x1f   :  { %s2913_s17 = smov 8   ;;  %s2914_s18 = smov 12  }
  0x20   :  { %s2917_s21 = smov 28   ;;  %s2918_s22 = smov 24  }
  0x21   :  { %s2919_s1 = smov [#allocation5]  }
  0x22   :  { %s2575_s23 = sshll.u32 %s2919_s1, 4  ;;  %s2576_s23 = int_to_ptr.vmem [resolvable:$true] %s2575_s23 }
  0x23   :  { %p2863_p9 = scmp.lt.s32.totalorder %s2576_s23, %s2576_s23 }
  0xf0   :  { %v2964_v4 = vpop.f32.mrb[0].mxu0 }
  0xf1   :  { %116 = vrot.lane.b32.xlu1 %v2964_v4, %s2889_s24  ;;  %110 = vrot.lane.b32.xlu0 %v2964_v4, %s2890_s25  ;;  %v2684_v5 = vpop.f32.mrb[1].mxu0  ;;  %s2858_s24 = scalar_lea.vmem %s2576_s23, 128 }
  0xf2   :  { %v85_v6 = vpop.f32.mrb[2].mxu0  ;;  %p2859_p8 = scmp.ne.s32.totalorder %s2576_s23, %s2858_s24  ;;  %p2864_p10 = scmp.lt.s32.totalorder %s2858_s24, %s2858_s24 }
  0xf3   :  { %v2685_v7 = vpop.f32.mrb[3].mxu0 }
  0xf4   :  { %p2865_p11 = por %p2864_p10, %p2863_p9 }
  0xf5   :  { %119 = vrot.lane.b32.xlu1 %v2964_v4, %s2891_s0  ;;  %113 = vrot.lane.b32.xlu0 %v2964_v4, %s2892_s26 }
  0xf6   :  { %p2866_p12 = pnand %p2865_p11, %p2859_p8 }
  0xf9   :  { %92 = vrot.lane.b32.xlu1 %v2964_v4, %s2893_s27  ;;  %89 = vrot.lane.b32.xlu0 %v2964_v4, %s2894_s28 }
  0xfd   :  { %122 = vrot.lane.b32.xlu1 %v2964_v4, %s2895_s29  ;;  %95 = vrot.lane.b32.xlu0 %v2964_v4, %s2896_s30 }
 0x101   :  { %128 = vrot.lane.b32.xlu1 %v2964_v4, %s2897_s3  ;;  %125 = vrot.lane.b32.xlu0 %v2964_v4, %s2898_s4 }
 0x105   :  { %98 = vrot.lane.b32.xlu1 %v2964_v4, %s2899_s5  ;;  %131 = vrot.lane.b32.xlu0 %v2964_v4, %s2900_s6 }
 0x109   :  { %104 = vrot.lane.b32.xlu1 %v2964_v4, %s2901_s7  ;;  %101 = vrot.lane.b32.xlu0 %v2964_v4, %s2902_s8 }
 0x10d   :  { %137 = vrot.lane.b32.xlu1 %v2964_v4, %s2903_s9  ;;  %107 = vrot.lane.b32.xlu0 %v2964_v4, %s2904_s10 }
 0x111   :  { %140 = vrot.lane.b32.xlu1 %v2964_v4, %s2905_s11  ;;  %134 = vrot.lane.b32.xlu0 %v2964_v4, %s2885_s19  ;;  %s2915_s19 = smov 20  }
 0x115   :  { %143 = vrot.lane.b32.xlu0 %v2964_v4, %s2906_s12 }
 0x163   :  { %v117_v15 = vpop.permute.xlu1 %116  ;;  %v111_v16 = vpop.permute.xlu0 %110 }
 0x164   :  { %v294_v19 = vcombine.low %v111_v16, %v117_v15  ;;  %v295_v20 = vcombine.high %v111_v16, %v117_v15 }
 0x166   :  { %v302_v26 = vrot.slane %v294_v19, %v2986_v18  ;;  %v309_v27 = vrot.slane %v295_v20, %v2986_v18 }
 0x167   :  { %v120_v21 = vpop.permute.xlu1 %119  ;;  %v114_v22 = vpop.permute.xlu0 %113 }
 0x168   :  { %v310_v23 = vcombine.low %v114_v22, %v120_v21  ;;  %v311_v24 = vcombine.high %v114_v22, %v120_v21 }
 0x16a   :  { %v318_v28 = vrot.slane %v310_v23, %v2986_v18  ;;  %v325_v29 = vrot.slane %v311_v24, %v2986_v18 }
 0x16b   :  { %v93_v30 = vpop.permute.xlu1 %92  ;;  %v90_v31 = vpop.permute.xlu0 %89 }
 0x16c   :  { %v358_v32 = vcombine.low %v302_v26, %v318_v28  ;;  %v359_v33 = vcombine.high %v302_v26, %v318_v28  ;;  %v374_v34 = vcombine.low %v309_v27, %v325_v29  ;;  %v375_v35 = vcombine.high %v309_v27, %v325_v29 }
 0x16d   :  { %v158_v40 = vcombine.low %v2964_v4, %v93_v30  ;;  %v159_v41 = vcombine.high %v2964_v4, %v93_v30 }
 0x16e   :  { %v366_v36 = vrot.slane %v358_v32, %v2988_v25  ;;  %v373_v37 = vrot.slane %v359_v33, %v2988_v25  ;;  %v382_v38 = vrot.slane %v374_v34, %v2988_v25  ;;  %v389_v39 = vrot.slane %v375_v35, %v2988_v25 }
 0x16f   :  { %v123_v42 = vpop.permute.xlu1 %122  ;;  %v96_v43 = vpop.permute.xlu0 %95  ;;  %v166_v54 = vrot.slane %v158_v40, %v2986_v18  ;;  %v173_v55 = vrot.slane %v159_v41, %v2986_v18 }
 0x170   :  { %v2595_v44 = vcombine.low %v366_v36, %v373_v37  ;;  %v2597_v45 = vcombine.high %v366_v36, %v373_v37  ;;  %v2599_v46 = vcombine.low %v382_v38, %v389_v39  ;;  %v2601_v47 = vcombine.high %v382_v38, %v389_v39 }
 0x171   :  { %v174_v48 = vcombine.low %v90_v31, %v96_v43  ;;  %v175_v49 = vcombine.high %v90_v31, %v96_v43 }
 0x172   :  { %v710_v50 = vrot.slane %v2595_v44, %v2986_v18  ;;  %v726_v51 = vrot.slane %v2597_v45, %v2986_v18  ;;  %v742_v52 = vrot.slane %v2599_v46, %v2986_v18  ;;  %v758_v53 = vrot.slane %v2601_v47, %v2986_v18 }
 0x173   :  { %v182_v56 = vrot.slane %v174_v48, %v2986_v18  ;;  %v189_v57 = vrot.slane %v175_v49, %v2986_v18  ;;  %v129_v58 = vpop.permute.xlu1 %128  ;;  %v126_v59 = vpop.permute.xlu0 %125 }
 0x174   :  { %v326_v60 = vcombine.low %v123_v42, %v129_v58  ;;  %v327_v61 = vcombine.high %v123_v42, %v129_v58  ;;  %v766_v62 = vcombine.low %v710_v50, %v726_v51  ;;  %v767_v63 = vcombine.high %v710_v50, %v726_v51 }
 0x175   :  { %v222_v1 = vcombine.low %v166_v54, %v182_v56  ;;  %v223_v2 = vcombine.high %v166_v54, %v182_v56  ;;  %v238_v3 = vcombine.low %v173_v55, %v189_v57  ;;  %v239_v5 = vcombine.high %v173_v55, %v189_v57 }
 0x176   :  { %v334_v6 = vrot.slane %v326_v60, %v2986_v18  ;;  %v341_v7 = vrot.slane %v327_v61, %v2986_v18  ;;  %v3011_v8 = vrot.slane %v766_v62, %v2988_v25  ;;  %v798_v9 = vcombine.low %v742_v52, %v758_v53 }
 0x177   :  { %v230_v10 = vrot.slane %v222_v1, %v2988_v25  ;;  %v237_v11 = vrot.slane %v223_v2, %v2988_v25  ;;  %v246_v12 = vrot.slane %v238_v3, %v2988_v25  ;;  %v253_v13 = vrot.slane %v239_v5, %v2988_v25  ;;  %v99_v14 = vpop.permute.xlu1 %98  ;;  %v132_v15 = vpop.permute.xlu0 %131 }
 0x178   :  { %v342_v16 = vcombine.low %v126_v59, %v132_v15  ;;  %v343_v17 = vcombine.high %v126_v59, %v132_v15  ;;  %v799_v19 = vcombine.high %v742_v52, %v758_v53  ;;  %v3018_v20 = vrot.slane %v798_v9, %v2988_v25 }
 0x179   :  { %v2587_v21 = vcombine.low %v230_v10, %v237_v11  ;;  %v2589_v22 = vcombine.high %v230_v10, %v237_v11  ;;  %v2591_v23 = vcombine.low %v246_v12, %v253_v13  ;;  %v2593_v24 = vcombine.high %v246_v12, %v253_v13 }
 0x17a   :  { %v350_v26 = vrot.slane %v342_v16, %v2986_v18  ;;  %v357_v27 = vrot.slane %v343_v17, %v2986_v18  ;;  %v830_v28 = vcombine.low %v3011_v8, %v3018_v20  ;;  %v831_v29 = vcombine.high %v3011_v8, %v3018_v20 }
 0x17b   :  { %v574_v30 = vrot.slane %v2587_v21, %v2986_v18  ;;  %v590_v31 = vrot.slane %v2589_v22, %v2986_v18  ;;  %v606_v32 = vrot.slane %v2591_v23, %v2986_v18  ;;  %v622_v33 = vrot.slane %v2593_v24, %v2986_v18  ;;  %v105_v34 = vpop.permute.xlu1 %104  ;;  %v102_v35 = vpop.permute.xlu0 %101 }
 0x17c   :  { %v390_v36 = vcombine.low %v334_v6, %v350_v26  ;;  %v391_v37 = vcombine.high %v334_v6, %v350_v26  ;;  %v406_v38 = vcombine.low %v341_v7, %v357_v27  ;;  %v407_v39 = vcombine.high %v341_v7, %v357_v27  ;;  %2687 = vmatpush3.xpose.msk.msra.mxu1 %vm974_vm2, %v830_v28 }
 0x17d   :  { %v631_v40 = vcombine.high %v574_v30, %v590_v31  ;;  %v663_v41 = vcombine.high %v606_v32, %v622_v33  ;;  %v3032_v42 = vrot.slane %v767_v63, %v2988_v25  ;;  %v3035_v43 = vrot.slane %v799_v19, %v2988_v25  ;;  %2691 = vmatprep.subr.mxu1 %v2887_v0 }
 0x17e   :  { %v398_v44 = vrot.slane %v390_v36, %v2988_v25  ;;  %v405_v45 = vrot.slane %v391_v37, %v2988_v25  ;;  %v414_v46 = vrot.slane %v406_v38, %v2988_v25  ;;  %v421_v47 = vrot.slane %v407_v39, %v2988_v25 }
 0x17f   :  { %v833_v48 = vcombine.high %v3032_v42, %v3035_v43  ;;  %v190_v49 = vcombine.low %v99_v14, %v105_v34  ;;  %v191_v50 = vcombine.high %v99_v14, %v105_v34  ;;  %v3044_v51 = vpop.permute.xlu1 %137  ;;  %v108_v52 = vpop.permute.xlu0 %107  ;;  %v630_v53 = vcombine.low %v574_v30, %v590_v31 }
 0x180   :  { %v2596_v54 = vcombine.low %v398_v44, %v405_v45  ;;  %v2598_v55 = vcombine.high %v398_v44, %v405_v45  ;;  %v2600_v56 = vcombine.low %v414_v46, %v421_v47  ;;  %v2602_v57 = vcombine.high %v414_v46, %v421_v47 }
 0x181   :  { %2702 = vmatpush3.xpose.msk.msra.mxu0 %vm974_vm2, %v833_v48  ;;  %v198_v58 = vrot.slane %v190_v49, %v2986_v18  ;;  %v205_v59 = vrot.slane %v191_v50, %v2986_v18  ;;  %v206_v60 = vcombine.low %v102_v35, %v108_v52  ;;  %v207_v61 = vcombine.high %v102_v35, %v108_v52 }
 0x182   :  { %v3050_v62 = vrot.slane %v2596_v54, %v2986_v18  ;;  %v3053_v63 = vrot.slane %v2598_v55, %v2986_v18  ;;  %v3056_v1 = vrot.slane %v2600_v56, %v2986_v18  ;;  %v3059_v2 = vrot.slane %v2602_v57, %v2986_v18  ;;  %2711 = vmatprep.subr.mxu0 %v2887_v0 }
 0x183   :  { %v214_v3 = vrot.slane %v206_v60, %v2986_v18  ;;  %v221_v5 = vrot.slane %v207_v61, %v2986_v18  ;;  %v638_v6 = vrot.slane %v630_v53, %v2988_v25  ;;  %v662_v7 = vcombine.low %v606_v32, %v622_v33  ;;  %v141_v9 = vpop.permute.xlu1 %140  ;;  %v135_v10 = vpop.permute.xlu0 %134 }
 0x184   :  { %v782_v11 = vcombine.low %v3050_v62, %v3053_v63  ;;  %v783_v12 = vcombine.high %v3050_v62, %v3053_v63  ;;  %v814_v13 = vcombine.low %v3056_v1, %v3059_v2  ;;  %v815_v14 = vcombine.high %v3056_v1, %v3059_v2 }
 0x185   :  { %v254_v15 = vcombine.low %v198_v58, %v214_v3  ;;  %v255_v16 = vcombine.high %v198_v58, %v214_v3  ;;  %v270_v17 = vcombine.low %v205_v59, %v221_v5  ;;  %v271_v19 = vcombine.high %v205_v59, %v221_v5 }
 0x186   :  { %v670_v21 = vrot.slane %v662_v7, %v2988_v25  ;;  %v645_v22 = vrot.slane %v631_v40, %v2988_v25  ;;  %v677_v23 = vrot.slane %v663_v41, %v2988_v25  ;;  %v430_v24 = vcombine.low %v135_v10, %v141_v9 }
 0x187   :  { %v262_v26 = vrot.slane %v254_v15, %v2988_v25  ;;  %v269_v27 = vrot.slane %v255_v16, %v2988_v25  ;;  %v278_v28 = vrot.slane %v270_v17, %v2988_v25  ;;  %v285_v30 = vrot.slane %v271_v19, %v2988_v25  ;;  %v144_v39 = vpop.permute.xlu0 %143 }
 0x188   :  { %v694_v31 = vcombine.low %v638_v6, %v670_v21  ;;  %v695_v32 = vcombine.high %v638_v6, %v670_v21  ;;  %v697_v33 = vcombine.high %v645_v22, %v677_v23  ;;  %v431_v34 = vcombine.high %v135_v10, %v141_v9 }
 0x189   :  { %v2588_v35 = vcombine.low %v262_v26, %v269_v27  ;;  %v2590_v36 = vcombine.high %v262_v26, %v269_v27  ;;  %v2592_v37 = vcombine.low %v278_v28, %v285_v30  ;;  %v2594_v38 = vcombine.high %v278_v28, %v285_v30 }
 0x18a   :  { %2689 = vmatmul.mubr.msk.f32.vlgmr.msra.gmra.mrb[0].mxu1 %vm974_vm2, %v694_v31  ;;  %2704 = vmatmul.mubr.msk.f32.vlgmr.msra.gmra.mrb[4].mxu0 %vm974_vm2, %v697_v33  ;;  %v438_v40 = vrot.slane %v430_v24, %v2986_v18  ;;  %v445_v41 = vrot.slane %v431_v34, %v2986_v18  ;;  %v832_v44 = vcombine.low %v3032_v42, %v3035_v43 }
 0x18b   :  { %v581_v45 = vrot.slane %v2588_v35, %v2986_v18  ;;  %v597_v46 = vrot.slane %v2590_v36, %v2986_v18  ;;  %v613_v47 = vrot.slane %v2592_v37, %v2986_v18  ;;  %v629_v48 = vrot.slane %v2594_v38, %v2986_v18  ;;  %2692 = vmatpush3.xpose.msk.msra.mxu1 %vm974_vm2, %v831_v29 }
 0x18c   :  { %2693 = vmatprep.mubr.msk.f32.mxu1 %vm2888_vm0, %v2887_v0  ;;  %2696 = vmatprep.subr.mxu1 %v2887_v0  ;;  %v446_v42 = vcombine.low %v3044_v51, %v144_v39  ;;  %v447_v43 = vcombine.high %v3044_v51, %v144_v39  ;;  %v696_v49 = vcombine.low %v645_v22, %v677_v23 }
 0x18d   :  { %v646_v50 = vcombine.low %v581_v45, %v597_v46  ;;  %v647_v52 = vcombine.high %v581_v45, %v597_v46  ;;  %v678_v53 = vcombine.low %v613_v47, %v629_v48  ;;  %v679_v54 = vcombine.high %v613_v47, %v629_v48  ;;  %2713 = vmatprep.mubr.msk.f32.mxu0 %vm2888_vm0, %v2887_v0 }
 0x18e   :  { %2694 = vmatmul.mubr.msk.f32.vlgmr.msra.gmra.mrb[2].mxu1 %vm974_vm2, %v695_v32  ;;  %v454_v8 = vrot.slane %v446_v42, %v2986_v18  ;;  %v461_v20 = vrot.slane %v447_v43, %v2986_v18  ;;  %v790_v29 = vrot.slane %v782_v11, %v2988_v25  ;;  %v822_v55 = vrot.slane %v814_v13, %v2988_v25 }
 0x18f   :  { %2697 = vmatpush3.xpose.msk.msra.mxu1 %vm974_vm2, %v832_v44  ;;  %2698 = vmatprep.mubr.msk.f32.mxu1 %vm2888_vm0, %v2887_v0  ;;  %v654_v51 = vrot.slane %v646_v50, %v2988_v25  ;;  %v686_v56 = vrot.slane %v678_v53, %v2988_v25  ;;  %v797_v57 = vrot.slane %v783_v12, %v2988_v25 }
 0x190   :  { %v494_v58 = vcombine.low %v438_v40, %v454_v8  ;;  %v495_v59 = vcombine.high %v438_v40, %v454_v8  ;;  %v510_v60 = vcombine.low %v445_v41, %v461_v20  ;;  %v511_v61 = vcombine.high %v445_v41, %v461_v20  ;;  %2706 = vmatprep.subr.mxu1 %v2887_v0 }
 0x191   :  { %v834_v62 = vcombine.low %v790_v29, %v822_v55  ;;  %v835_v63 = vcombine.high %v790_v29, %v822_v55  ;;  %v698_v3 = vcombine.low %v654_v51, %v686_v56  ;;  %v699_v5 = vcombine.high %v654_v51, %v686_v56 }
 0x192   :  { %v502_v6 = vrot.slane %v494_v58, %v2988_v25  ;;  %v509_v7 = vrot.slane %v495_v59, %v2988_v25  ;;  %v518_v9 = vrot.slane %v510_v60, %v2988_v25  ;;  %v525_v10 = vrot.slane %v511_v61, %v2988_v25  ;;  %2699 = vmatmul.mubr.msk.f32.vlgmr.msra.gmra.mrb[4].mxu1 %vm974_vm2, %v696_v49 }
 0x193   :  { %2707 = vmatpush3.xpose.msk.msra.mxu1 %vm974_vm2, %v834_v62  ;;  %2712 = vmatpush3.xpose.msk.msra.mxu0 %vm974_vm2, %v835_v63  ;;  %v829_v11 = vrot.slane %v815_v14, %v2988_v25  ;;  %v661_v12 = vrot.slane %v647_v52, %v2988_v25  ;;  %v693_v13 = vrot.slane %v679_v54, %v2988_v25 }
 0x194   :  { %v2603_v15 = vcombine.low %v502_v6, %v509_v7  ;;  %v2605_v16 = vcombine.high %v502_v6, %v509_v7  ;;  %v2607_v17 = vcombine.low %v518_v9, %v525_v10  ;;  %v2609_v19 = vcombine.high %v518_v9, %v525_v10  ;;  %2708 = vmatprep.mubr.msk.f32.mxu1 %vm2888_vm0, %v2887_v0 }
 0x195   :  { %2716 = vmatprep.subr.mxu1 %v2887_v0  ;;  %2721 = vmatprep.subr.mxu0 %v2887_v0  ;;  %v836_v21 = vcombine.low %v797_v57, %v829_v11  ;;  %v837_v22 = vcombine.high %v797_v57, %v829_v11  ;;  %v700_v24 = vcombine.low %v661_v12, %v693_v13 }
 0x196   :  { %v846_v1 = vrot.slane %v2603_v15, %v2986_v18  ;;  %v862_v2 = vrot.slane %v2605_v16, %v2986_v18  ;;  %v878_v14 = vrot.slane %v2607_v17, %v2986_v18  ;;  %v894_v23 = vrot.slane %v2609_v19, %v2986_v18  ;;  %2709 = vmatmul.mubr.msk.f32.vlgmr.msra.gmra.mrb[6].mxu1 %vm974_vm2, %v698_v3 }
 0x197   :  { %2714 = vmatmul.mubr.msk.f32.vlgmr.msra.gmra.mrb[6].mxu0 %vm974_vm2, %v699_v5  ;;  %2717 = vmatpush3.xpose.msk.msra.mxu1 %vm974_vm2, %v836_v21  ;;  %v701_v30 = vcombine.high %v661_v12, %v693_v13 }
 0x198   :  { %2722 = vmatpush3.xpose.msk.msra.mxu0 %vm974_vm2, %v837_v22  ;;  %2718 = vmatprep.mubr.msk.f32.mxu1 %vm2888_vm0, %v2887_v0  ;;  %v902_v26 = vcombine.low %v846_v1, %v862_v2  ;;  %v934_v27 = vcombine.low %v878_v14, %v894_v23  ;;  %v903_v28 = vcombine.high %v846_v1, %v862_v2 }
 0x199   :  { %2723 = vmatprep.mubr.msk.f32.mxu0 %vm2888_vm0, %v2887_v0  ;;  %2726 = vmatprep.subr.mxu1 %v2887_v0  ;;  %v935_v31 = vcombine.high %v878_v14, %v894_v23 }
 0x19a   :  { %2719 = vmatmul.mubr.msk.f32.vlgmr.msra.gmra.mrb[8].mxu1 %vm974_vm2, %v700_v24  ;;  %2731 = vmatprep.subr.mxu0 %v2887_v0  ;;  %v910_v32 = vrot.slane %v902_v26, %v2988_v25  ;;  %v942_v33 = vrot.slane %v934_v27, %v2988_v25  ;;  %v3148_v34 = vrot.slane %v903_v28, %v2988_v25 }
 0x19b   :  { %2724 = vmatmul.mubr.msk.f32.vlgmr.msra.gmra.mrb[8].mxu0 %vm974_vm2, %v701_v30  ;;  %2728 = vmatprep.mubr.msk.f32.mxu1 %vm2888_vm0, %v2887_v0  ;;  %v3154_v35 = vrot.slane %v935_v31, %v2988_v25 }
 0x19c   :  { %v966_v36 = vcombine.low %v910_v32, %v942_v33  ;;  %v967_v37 = vcombine.high %v910_v32, %v942_v33  ;;  %2733 = vmatprep.mubr.msk.f32.mxu0 %vm2888_vm0, %v2887_v0 }
 0x19d   :  { %v968_v38 = vcombine.low %v3148_v34, %v3154_v35  ;;  %v969_v39 = vcombine.high %v3148_v34, %v3154_v35 }
 0x19e   :  { %2727 = vmatpush3.msra.mxu1 %v966_v36  ;;  %2732 = vmatpush3.msra.mxu0 %v967_v37 }
 0x19f   :  { %2736 = vmatprep.subr.mxu1 %v2887_v0  ;;  %2741 = vmatprep.subr.mxu0 %v2887_v0 }
 0x25d   :  { %v1047_v40 = vpop.f32.mrb[0].mxu1  ;;  %v1275_v41 = vpop.f32.mrb[4].mxu0 }
 0x25e   :  { %v2690_v44 = vpop.f32.mrb[1].mxu1  ;;  %v2705_v45 = vpop.f32.mrb[5].mxu0  ;;  %v1584_v46 = vsel %vm1583_vm3, %v1047_v40, -inf  ;;  %v1593_v43 = vsel %vm1583_vm3, %v1275_v41, -inf }
 0x25f   :  { %1585 = vmax.xlane.f32.xlu1 %v1584_v46 }
 0x261   :  { %v1123_v47 = vpop.f32.mrb[2].mxu1 }
 0x262   :  { %v2695_v48 = vpop.f32.mrb[3].mxu1  ;;  %v1587_v42 = vsel %vm1583_vm3, %v1123_v47, -inf }
 0x263   :  { %1588 = vmax.xlane.f32.xlu0 %v1587_v42  ;;  %1594 = vmax.xlane.f32.xlu1 %v1593_v43 }
 0x265   :  { %v1199_v49 = vpop.f32.mrb[4].mxu1 }
 0x266   :  { %v2700_v50 = vpop.f32.mrb[5].mxu1  ;;  %v1590_v52 = vsel %vm1583_vm3, %v1199_v49, -inf }
 0x267   :  { %1591 = vmax.xlane.f32.xlu0 %v1590_v52 }
 0x269   :  { %v1351_v53 = vpop.f32.mrb[6].mxu1 }
 0x26a   :  { %v1427_v54 = vpop.f32.mrb[6].mxu0  ;;  %v2710_v8 = vpop.f32.mrb[7].mxu1  ;;  %v1596_v20 = vsel %vm1583_vm3, %v1351_v53, -inf }
 0x26b   :  { %v2715_v29 = vpop.f32.mrb[7].mxu0  ;;  %1597 = vmax.xlane.f32.xlu0 %v1596_v20  ;;  %v1599_v55 = vsel %vm1583_vm3, %v1427_v54, -inf }
 0x26c   :  { %1600 = vmax.xlane.f32.xlu1 %v1599_v55 }
 0x26d   :  { %v1503_v51 = vpop.f32.mrb[8].mxu1 }
 0x26e   :  { %v1579_v56 = vpop.f32.mrb[8].mxu0  ;;  %v2720_v57 = vpop.f32.mrb[9].mxu1  ;;  %v1602_v58 = vsel %vm1583_vm3, %v1503_v51, -inf }
 0x26f   :  { %v2725_v59 = vpop.f32.mrb[9].mxu0  ;;  %1603 = vmax.xlane.f32.xlu0 %v1602_v58  ;;  %v1605_v60 = vsel %vm1583_vm3, %v1579_v56, -inf }
 0x270   :  { %1606 = vmax.xlane.f32.xlu1 %v1605_v60 }
 0x281   :  { %149 = vrot.lane.b32.xlu1 %v2964_v4, %s2909_s13 }
 0x285   :  { %146 = vrot.lane.b32.xlu0 %v2964_v4, %s2910_s14 }
 0x2ec   :  { %v1586_v61 = vpop.xlane.xlu1 %1585 }
 0x2ed   :  { %v1608_v62 = vsub.f32 %v1047_v40, %v1586_v61 }
 0x2ef   :  { %v1616_v63 = vmul.f32 1.442695, %v1608_v62 }
 0x2f0   :  { %v1589_v3 = vpop.xlane.xlu0 %1588  ;;  %v1595_v5 = vpop.xlane.xlu1 %1594 }
 0x2f1   :  { %2804 = vpow2.f32 %v1616_v63  ;;  %v1609_v6 = vsub.f32 %v1123_v47, %v1589_v3  ;;  %v1611_v7 = vsub.f32 %v1275_v41, %v1595_v5 }
 0x2f3   :  { %v1622_v9 = vmul.f32 1.442695, %v1611_v7  ;;  %v1618_v10 = vmul.f32 1.442695, %v1609_v6 }
 0x2f4   :  { %v1592_v11 = vpop.xlane.xlu0 %1591 }
 0x2f5   :  { %2806 = vpow2.f32 %v1622_v9  ;;  %v1610_v12 = vsub.f32 %v1199_v49, %v1592_v11 }
 0x2f6   :  { %2808 = vpow2.f32 %v1618_v10 }
 0x2f7   :  { %v1620_v21 = vmul.f32 1.442695, %v1610_v12 }
 0x2f8   :  { %v1598_v13 = vpop.xlane.xlu0 %1597 }
 0x2f9   :  { %v1601_v15 = vpop.xlane.xlu1 %1600  ;;  %v1612_v19 = vsub.f32 %v1351_v53, %v1598_v13 }
 0x2fa   :  { %v1613_v16 = vsub.f32 %v1427_v54, %v1601_v15 }
 0x2fb   :  { %v2805_v17 = vpop.eup %2804  ;;  %v1624_v26 = vmul.f32 1.442695, %v1612_v19 }
 0x2fc   :  { %v1626_v22 = vmul.f32 1.442695, %v1613_v16  ;;  %v1632_v1 = vsel %vm1583_vm3, %v2805_v17, 0.0  ;;  %v1604_v2 = vpop.xlane.xlu0 %1603 }
 0x2fd   :  { %1633 = vadd.xlane.f32.xlu0 %v1632_v1  ;;  %v1614_v14 = vsub.f32 %v1503_v51, %v1604_v2  ;;  %v1607_v23 = vpop.xlane.xlu1 %1606 }
 0x2fe   :  { %2810 = vpow2.f32 %v1626_v22  ;;  %v1615_v24 = vsub.f32 %v1579_v56, %v1607_v23 }
 0x2ff   :  { %v2807_v27 = vpop.eup %2806  ;;  %2812 = vpow2.f32 %v1620_v21  ;;  %v1628_v28 = vmul.f32 1.442695, %v1614_v14 }
 0x300   :  { %v1630_v30 = vmul.f32 1.442695, %v1615_v24  ;;  %v1641_v31 = vsel %vm1583_vm3, %v2807_v27, 0.0  ;;  %v2809_v32 = vpop.eup %2808  ;;  %v147_v43 = vpop.permute.xlu0 %146 }
 0x301   :  { %1642 = vadd.xlane.f32.xlu1 %v1641_v31  ;;  %v1635_v33 = vsel %vm1583_vm3, %v2809_v32, 0.0  ;;  %v150_v50 = vpop.permute.xlu1 %149 }
 0x302   :  { %2814 = vpow2.f32 %v1630_v30 }
 0x303   :  { %2816 = vpow2.f32 %v1624_v26 }
 0x304   :  { %2818 = vpow2.f32 %v1628_v28 }
 0x305   :  { %1636 = vadd.xlane.f32.xlu1 %v1635_v33 }
 0x308   :  { %v3177_v36 = vpop.eup %2810 }
 0x309   :  { %v1647_v37 = vsel %vm1583_vm3, %v3177_v36, 0.0  ;;  %v2813_v40 = vpop.eup %2812 }
 0x30a   :  { %1648 = vadd.xlane.f32.xlu0 %v1647_v37  ;;  %v1638_v45 = vsel %vm1583_vm3, %v2813_v40, 0.0 }
 0x30c   :  { %v3181_v41 = vpop.eup %2814 }
 0x30d   :  { %v3183_v44 = vpop.eup %2816  ;;  %v1653_v46 = vsel %vm1583_vm3, %v3181_v41, 0.0 }
 0x30e   :  { %v3188_v47 = vpop.eup %2818  ;;  %1639 = vadd.xlane.f32.xlu0 %v1638_v45  ;;  %1654 = vadd.xlane.f32.xlu1 %v1653_v46  ;;  %v1644_v42 = vsel %vm1583_vm3, %v3183_v44, 0.0 }
 0x30f   :  { %v1650_v48 = vsel %vm1583_vm3, %v3188_v47, 0.0 }
 0x312   :  { %1651 = vadd.xlane.f32.xlu0 %v1650_v48  ;;  %1645 = vadd.xlane.f32.xlu1 %v1644_v42 }
 0x323   :  { %152 = vrot.lane.b32.xlu1 %v2964_v4, %s2911_s15 }
 0x328   :  { %155 = vrot.lane.b32.xlu0 %v2964_v4, %s2912_s16 }
 0x38a   :  { %v1634_v49 = vpop.xlane.xlu0 %1633 }
 0x38b   :  { %2820 = vrcp.f32 %v1634_v49 }
 0x38e   :  { %v1643_v52 = vpop.xlane.xlu1 %1642 }
 0x392   :  { %v1637_v53 = vpop.xlane.xlu1 %1636 }
 0x393   :  { %2822 = vrcp.f32 %v1637_v53 }
 0x394   :  { %2824 = vrcp.f32 %v1643_v52 }
 0x395   :  { %v2821_v54 = vpop.eup %2820 }
 0x396   :  { %v1664_v8 = vmul.f32 %v2821_v54, %v2805_v17 }
 0x397   :  { %v1649_v20 = vpop.xlane.xlu0 %1648 }
 0x398   :  { %2729 = vmatmul.mubr.msk.f32.vlgmr.msra.gmra.mrb[10].mxu1 %vm1583_vm3, %v1664_v8 }
 0x399   :  { %2737 = vmatpush3.msra.mxu1 %v968_v38  ;;  %2738 = vmatprep.mubr.msk.f32.mxu1 %vm2888_vm0, %v2887_v0 }
 0x39a   :  { %2746 = vmatprep.subr.mxu1 %v2887_v0 }
 0x39b   :  { %v1640_v4 = vpop.xlane.xlu0 %1639  ;;  %v1655_v29 = vpop.xlane.xlu1 %1654 }
 0x39c   :  { %2826 = vrcp.f32 %v1640_v4 }
 0x39d   :  { %v2823_v55 = vpop.eup %2822  ;;  %2828 = vrcp.f32 %v1649_v20 }
 0x39e   :  { %v1665_v51 = vmul.f32 %v2823_v55, %v2809_v32  ;;  %v2825_v58 = vpop.eup %2824 }
 0x39f   :  { %v1652_v56 = vpop.xlane.xlu0 %1651  ;;  %v1646_v57 = vpop.xlane.xlu1 %1645  ;;  %v1667_v38 = vmul.f32 %v2825_v58, %v2807_v27 }
 0x3a0   :  { %2734 = vmatmul.mubr.msk.f32.vlgmr.msra.gmra.mrb[10].mxu0 %vm1583_vm3, %v1665_v51  ;;  %2830 = vrcp.f32 %v1646_v57 }
 0x3a1   :  { %2742 = vmatpush3.msra.mxu0 %v969_v39  ;;  %2743 = vmatprep.mubr.msk.f32.mxu0 %vm2888_vm0, %v2887_v0  ;;  %2832 = vrcp.f32 %v1655_v29 }
 0x3a2   :  { %2751 = vmatprep.subr.mxu0 %v2887_v0  ;;  %2834 = vrcp.f32 %v1652_v56 }
 0x3a3   :  { %v156_v59 = vpop.permute.xlu0 %155  ;;  %v153_v60 = vpop.permute.xlu1 %152 }
 0x3a4   :  { %v478_v61 = vcombine.low %v150_v50, %v156_v59  ;;  %v479_v62 = vcombine.high %v150_v50, %v156_v59  ;;  %v462_v63 = vcombine.low %v147_v43, %v153_v60  ;;  %v463_v3 = vcombine.high %v147_v43, %v153_v60  ;;  %2744 = vmatmul.mubr.msk.f32.vlgmr.msra.gmra.mrb[12].mxu0 %vm1583_vm3, %v1667_v38 }
 0x3a5   :  { %2753 = vmatprep.mubr.msk.f32.mxu0 %vm2888_vm0, %v2887_v0 }
 0x3a6   :  { %v2827_v5 = vpop.eup %2826  ;;  %v486_v6 = vrot.slane %v478_v61, %v2986_v18  ;;  %v493_v34 = vrot.slane %v479_v62, %v2986_v18  ;;  %v470_v35 = vrot.slane %v462_v63, %v2986_v18  ;;  %v477_v39 = vrot.slane %v463_v3, %v2986_v18 }
 0x3a7   :  { %v1666_v7 = vmul.f32 %v2827_v5, %v2813_v40  ;;  %v2829_v31 = vpop.eup %2828 }
 0x3a8   :  { %v526_v9 = vcombine.low %v470_v35, %v486_v6  ;;  %v527_v10 = vcombine.high %v470_v35, %v486_v6  ;;  %v542_v11 = vcombine.low %v477_v39, %v493_v34  ;;  %v543_v12 = vcombine.high %v477_v39, %v493_v34 }
 0x3a9   :  { %2739 = vmatmul.mubr.msk.f32.vlgmr.msra.gmra.mrb[12].mxu1 %vm1583_vm3, %v1666_v7  ;;  %v1669_v43 = vmul.f32 %v2829_v31, %v3177_v36 }
 0x3aa   :  { %v534_v13 = vrot.slane %v526_v9, %v2988_v25  ;;  %v541_v15 = vrot.slane %v527_v10, %v2988_v25  ;;  %v550_v16 = vrot.slane %v542_v11, %v2988_v25  ;;  %2748 = vmatprep.mubr.msk.f32.mxu1 %vm2888_vm0, %v2887_v0  ;;  %v557_v17 = vrot.slane %v543_v12, %v2988_v25  ;;  %v2831_v33 = vpop.eup %2830 }
 0x3ab   :  { %v2833_v42 = vpop.eup %2832  ;;  %v1668_v49 = vmul.f32 %v2831_v33, %v3183_v44 }
 0x3ac   :  { %v2604_v19 = vcombine.low %v534_v13, %v541_v15  ;;  %v2606_v21 = vcombine.high %v534_v13, %v541_v15  ;;  %v2608_v22 = vcombine.low %v550_v16, %v557_v17  ;;  %v2610_v1 = vcombine.high %v550_v16, %v557_v17  ;;  %v2835_v50 = vpop.eup %2834 }
 0x3ad   :  { %v1671_v54 = vmul.f32 %v2833_v42, %v3181_v41  ;;  %v1670_v8 = vmul.f32 %v2835_v50, %v3188_v47 }
 0x3ae   :  { %v853_v2 = vrot.slane %v2604_v19, %v2986_v18  ;;  %v869_v14 = vrot.slane %v2606_v21, %v2986_v18  ;;  %v885_v23 = vrot.slane %v2608_v22, %v2986_v18  ;;  %v901_v24 = vrot.slane %v2610_v1, %v2986_v18 }
 0x3b0   :  { %v918_v26 = vcombine.low %v853_v2, %v869_v14  ;;  %v919_v27 = vcombine.high %v853_v2, %v869_v14  ;;  %v950_v28 = vcombine.low %v885_v23, %v901_v24  ;;  %v951_v30 = vcombine.high %v885_v23, %v901_v24 }
 0x3b2   :  { %v926_v32 = vrot.slane %v918_v26, %v2988_v25  ;;  %v958_v37 = vrot.slane %v950_v28, %v2988_v25  ;;  %v933_v40 = vrot.slane %v919_v27, %v2988_v25  ;;  %v965_v45 = vrot.slane %v951_v30, %v2988_v25 }
 0x3b4   :  { %v970_v46 = vcombine.low %v926_v32, %v958_v37  ;;  %v971_v48 = vcombine.high %v926_v32, %v958_v37  ;;  %v972_v52 = vcombine.low %v933_v40, %v965_v45  ;;  %v973_v53 = vcombine.high %v933_v40, %v965_v45 }
 0x3b6   :  { %2747 = vmatpush3.msra.mxu1 %v970_v46  ;;  %2752 = vmatpush3.msra.mxu0 %v971_v48 }
 0x3b7   :  { %2749 = vmatmul.mubr.msk.f32.vlgmr.msra.gmra.mrb[14].mxu1 %vm1583_vm3, %v1668_v49  ;;  %2754 = vmatmul.mubr.msk.f32.vlgmr.msra.gmra.mrb[14].mxu0 %vm1583_vm3, %v1669_v43 }
 0x3b8   :  { %2756 = vmatprep.subr.mxu1 %v2887_v0  ;;  %2761 = vmatprep.subr.mxu0 %v2887_v0 }
 0x3b9   :  { %2757 = vmatpush3.msra.mxu1 %v972_v52  ;;  %2762 = vmatpush3.msra.mxu0 %v973_v53 }
 0x3ba   :  { %2758 = vmatprep.mubr.msk.f32.mxu1 %vm2888_vm0, %v2887_v0  ;;  %2763 = vmatprep.mubr.msk.f32.mxu0 %vm2888_vm0, %v2887_v0 }
 0x3bb   :  { %2759 = vmatmul.mubr.msk.f32.vlgmr.msra.gmra.mrb[16].mxu1 %vm1583_vm3, %v1670_v8  ;;  %2764 = vmatmul.mubr.msk.f32.vlgmr.msra.gmra.mrb[16].mxu0 %vm1583_vm3, %v1671_v54 }
 0x46b   :  { %v1741_v36 = vpop.f32.mrb[10].mxu1 }
 0x46c   :  { %v2730_v44 = vpop.f32.mrb[11].mxu1 }
 0x473   :  { %v1814_v20 = vpop.f32.mrb[10].mxu0 }
 0x474   :  { %v2735_v4 = vpop.f32.mrb[11].mxu0 }
 0x477   :  { %v1960_v29 = vpop.f32.mrb[12].mxu0 }
 0x478   :  { %v2272_v41 = vcombine.low %v1814_v20, %v1960_v29  ;;  %v2273_v55 = vcombine.high %v1814_v20, %v1960_v29  ;;  %v2745_v47 = vpop.f32.mrb[13].mxu0 }
 0x47a   :  { %v2280_v38 = vrot.slane %v2272_v41, %v2986_v18  ;;  %v2287_v0 = vrot.slane %v2273_v55, %v2986_v18 }
 0x47c   :  { %v1887_v51 = vpop.f32.mrb[12].mxu1 }
 0x47d   :  { %v2256_v56 = vcombine.low %v1741_v36, %v1887_v51  ;;  %v2257_v57 = vcombine.high %v1741_v36, %v1887_v51  ;;  %v2740_v58 = vpop.f32.mrb[13].mxu1 }
 0x47f   :  { %v2264_v59 = vrot.slane %v2256_v56, %v2986_v18  ;;  %v2271_v60 = vrot.slane %v2257_v57, %v2986_v18 }
 0x481   :  { %v2320_v61 = vcombine.low %v2264_v59, %v2280_v38  ;;  %v2321_v62 = vcombine.high %v2264_v59, %v2280_v38  ;;  %v2336_v63 = vcombine.low %v2271_v60, %v2287_v0  ;;  %v2337_v3 = vcombine.high %v2271_v60, %v2287_v0 }
 0x483   :  { %v2328_v5 = vrot.slane %v2320_v61, %v2988_v25  ;;  %v2335_v6 = vrot.slane %v2321_v62, %v2988_v25  ;;  %v2344_v34 = vrot.slane %v2336_v63, %v2988_v25  ;;  %v2351_v35 = vrot.slane %v2337_v3, %v2988_v25 }
 0x485   :  { %v2635_v39 = vcombine.low %v2328_v5, %v2335_v6  ;;  %v2637_v7 = vcombine.high %v2328_v5, %v2335_v6  ;;  %v2639_v9 = vcombine.low %v2344_v34, %v2351_v35  ;;  %v2641_v10 = vcombine.high %v2344_v34, %v2351_v35 }
 0x487   :  { %v2400_v11 = vrot.slane %v2635_v39, %v2986_v18  ;;  %v2416_v12 = vrot.slane %v2637_v7, %v2986_v18  ;;  %v2432_v13 = vrot.slane %v2639_v9, %v2986_v18  ;;  %v2448_v15 = vrot.slane %v2641_v10, %v2986_v18 }
 0x489   :  { %v2457_v16 = vcombine.high %v2400_v11, %v2416_v12  ;;  %v2489_v17 = vcombine.high %v2432_v13, %v2448_v15  ;;  %v2456_v19 = vcombine.low %v2400_v11, %v2416_v12  ;;  %v2488_v21 = vcombine.low %v2432_v13, %v2448_v15 }
 0x48a   :  { %v2033_v22 = vpop.f32.mrb[14].mxu1  ;;  %v2106_v1 = vpop.f32.mrb[14].mxu0 }
 0x48b   :  { %v2471_v2 = vrot.slane %v2457_v16, %v2988_v25  ;;  %v2503_v14 = vrot.slane %v2489_v17, %v2988_v25  ;;  %v3261_v23 = vrot.slane %v2456_v19, %v2988_v25  ;;  %v3264_v24 = vrot.slane %v2488_v21, %v2988_v25  ;;  %v2750_v26 = vpop.f32.mrb[15].mxu1  ;;  %v2755_v27 = vpop.f32.mrb[15].mxu0 }
 0x48d   :  { %v2522_v28 = vcombine.low %v2471_v2, %v2503_v14  ;;  %v2521_v30 = vcombine.high %v3261_v23, %v3264_v24  ;;  %v2520_v31 = vcombine.low %v3261_v23, %v3264_v24  ;;  %v2523_v32 = vcombine.high %v2471_v2, %v2503_v14 }
 0x48e   :  { %v2179_v33 = vpop.f32.mrb[16].mxu1  ;;  %v2252_v37 = vpop.f32.mrb[16].mxu0 }
 0x48f   :  { %2533 = vrot.lane.b32.xlu0 %v2522_v28, %s2913_s17  ;;  %2529 = vrot.lane.b32.xlu1 %v2521_v30, %s2886_s20  ;;  %v2288_v40 = vcombine.low %v2033_v22, %v2179_v33  ;;  %v2289_v45 = vcombine.high %v2033_v22, %v2179_v33  ;;  %v2304_v46 = vcombine.low %v2106_v1, %v2252_v37  ;;  %v2760_v42 = vpop.f32.mrb[17].mxu1  ;;  %v2765_v43 = vpop.f32.mrb[17].mxu0  ;;  %s2916_s20 = smov 16  }
 0x490   :  { %v2305_v48 = vcombine.high %v2106_v1, %v2252_v37 }
 0x491   :  { %v2296_v49 = vrot.slane %v2288_v40, %v2986_v18  ;;  %v2303_v50 = vrot.slane %v2289_v45, %v2986_v18  ;;  %v2312_v52 = vrot.slane %v2304_v46, %v2986_v18 }
 0x492   :  { %v2319_v53 = vrot.slane %v2305_v48, %v2986_v18 }
 0x493   :  { %2537 = vrot.lane.b32.xlu1 %v2523_v32, %s2914_s18  ;;  %v2352_v54 = vcombine.low %v2296_v49, %v2312_v52  ;;  %v2353_v8 = vcombine.high %v2296_v49, %v2312_v52 }
 0x494   :  { %v2368_v36 = vcombine.low %v2303_v50, %v2319_v53  ;;  %v2369_v44 = vcombine.high %v2303_v50, %v2319_v53 }
 0x495   :  { %v2360_v20 = vrot.slane %v2352_v54, %v2988_v25  ;;  %v2367_v4 = vrot.slane %v2353_v8, %v2988_v25 }
 0x496   :  { %v2376_v29 = vrot.slane %v2368_v36, %v2988_v25  ;;  %v2383_v41 = vrot.slane %v2369_v44, %v2988_v25 }
 0x497   :  { %v2636_v55 = vcombine.low %v2360_v20, %v2367_v4  ;;  %v2638_v47 = vcombine.high %v2360_v20, %v2367_v4 }
 0x498   :  { %v2640_v51 = vcombine.low %v2376_v29, %v2383_v41  ;;  %v2642_v56 = vcombine.high %v2376_v29, %v2383_v41 }
 0x499   :  { %v2407_v57 = vrot.slane %v2636_v55, %v2986_v18  ;;  %v2423_v58 = vrot.slane %v2638_v47, %v2986_v18 }
 0x49a   :  { %v2439_v38 = vrot.slane %v2640_v51, %v2986_v18  ;;  %v2455_v0 = vrot.slane %v2642_v56, %v2986_v18 }
 0x49b   :  { %v2472_v59 = vcombine.low %v2407_v57, %v2423_v58  ;;  %v2473_v61 = vcombine.high %v2407_v57, %v2423_v58 }
 0x49c   :  { %v2504_v60 = vcombine.low %v2439_v38, %v2455_v0  ;;  %v2505_v62 = vcombine.high %v2439_v38, %v2455_v0 }
 0x49d   :  { %v2480_v63 = vrot.slane %v2472_v59, %v2988_v25  ;;  %v2487_v5 = vrot.slane %v2473_v61, %v2988_v25 }
 0x49e   :  { %v2512_v3 = vrot.slane %v2504_v60, %v2988_v25  ;;  %v2519_v6 = vrot.slane %v2505_v62, %v2988_v25 }
 0x4a0   :  { %v2525_v34 = vcombine.high %v2480_v63, %v2512_v3  ;;  %v2524_v35 = vcombine.low %v2480_v63, %v2512_v3  ;;  %v2527_v39 = vcombine.high %v2487_v5, %v2519_v6  ;;  %v2526_v7 = vcombine.low %v2487_v5, %v2519_v6 }
 0x4a2   :  { %2545 = vrot.lane.b32.xlu1 %v2525_v34, %s2915_s19  ;;  %2541 = vrot.lane.b32.xlu0 %v2524_v35, %s2916_s20 }
 0x4a6   :  { %2553 = vrot.lane.b32.xlu1 %v2527_v39, %s2917_s21  ;;  %2549 = vrot.lane.b32.xlu0 %v2526_v7, %s2918_s22 }
 0x501   :  { %v2530_v18 = vpop.permute.xlu1 %2529  ;;  %v2534_v9 = vpop.permute.xlu0 %2533 }
 0x502   :  { %v2556_v10 = vsel %vm974_vm2, %v2520_v31, %v2530_v18 }
 0x503   :  { %v2557_v25 = vsel %vm1583_vm3, %v2556_v10, %v2534_v9 }
 0x505   :  { %v2538_v11 = vpop.permute.xlu1 %2537 }
 0x506   :  { %v2559_v12 = vsel %vm2558_vm4, %v2557_v25, %v2538_v11 }
 0x514   :  { %v2546_v13 = vpop.permute.xlu1 %2545  ;;  %v2542_v15 = vpop.permute.xlu0 %2541 }
 0x515   :  { %v2561_v16 = vsel %vm2560_vm5, %v2559_v12, %v2542_v15 }
 0x516   :  { %v2563_v19 = vsel %vm2562_vm6, %v2561_v16, %v2546_v13 }
 0x518   :  { %v2554_v17 = vpop.permute.xlu1 %2553  ;;  %v2550_v21 = vpop.permute.xlu0 %2549 }
 0x519   :  { %v2565_v22 = vsel %vm2564_vm7, %v2563_v19, %v2550_v21 }
 0x51a   :  { %v2567_v1 = vsel %vm2566_vm8, %v2565_v22, %v2554_v17 }
 0x51b   :  { %2568 = vst.msk [vmem:[#allocation5] sm:$0xff] %vm44_vm1, %v2567_v1 }
 0x51c   :  { %2869 = shalt.err (!%p2866_p12)
}
 0x51d   :  { %s2870_s26 = scalar_lea.hbm %s3304_s2, 128 }
 0x51e   :  { %p2871_p13 = scmp.ne.s32.totalorder %s3304_s2, %s2870_s26  ;;  %p2874_p0 = scmp.lt.u32.totalorder %s2870_s26, %s3304_s2 }
 0x520   :  { %p2876_p1 = pnand %p2874_p0, %p2871_p13 }
 0x522   :  { %2879 = shalt.err (!%p2876_p1)
}
 0x523   :  { %2578 = dma.vmem_to_hbm [thread:$0]  %s2576_s23, 128, %s3304_s2, [#allocation4]  }
 0x524   :  { %2882 = dma.done.wait [#allocation4], 128  }
 0x525   :  { %2883 = vsyncadd [#allocation4], 4294967168 }
 0x526   :  { %2582 = vsyncpa [#allocation3], 1 }
 0x527   :  { %2583 = vsyncpa [#allocation4], 1 }

</bundles_post_ra>
